<compile_context>
chip_gen: v6e
topology: v6e:2x2x1
jax: 0.10.0
libtpu: 0.0.40
codegen_flags: <defaults>
</compile_context>

<pallas_src>
import math

import jax
import jax.numpy as jnp
from jax.experimental import pallas as pl
from jax.experimental.pallas import tpu as pltpu

_LANE = 128
_SUBLANE = 8


def _round_up(x, m):
    return (x + m - 1) // m * m


def _make_mlp_kernel(n_layers, compute_dtype):
    """Kernel: x -> tanh(...tanh(x @ W0 + b0)... @ W_{n-1} + b_{n-1})."""

    def kernel(x_ref, *refs):
        o_ref = refs[-1]
        wb = refs[:-1]  # [w0, b0, w1, b1, ...], all resident in VMEM
        x = x_ref[...]  # compute_dtype (bf16 by default)
        for i in range(n_layers):  # static unroll: activations never leave chip
            w = wb[2 * i][...]       # compute_dtype (bf16)
            b = wb[2 * i + 1][...]   # f32
            # bf16 operands, f32 accumulate on the MXU; bias add on the VPU.
            y = jnp.dot(x, w, preferred_element_type=jnp.float32) + b
            h = jnp.tanh(y)          # f32, lands on the EUP slot
            x = h.astype(compute_dtype) if (i + 1) < n_layers else h
        o_ref[...] = x.astype(o_ref.dtype)

    return kernel


def init_params(layer_shape, key):
    """Mirrors the PyTorch module's explicit init:
    W ~ U(-stdv, stdv) with stdv = sqrt(6/(fan_in+fan_out)), b = 0.
    Returns list of (W_transposed (in, out) f32, bias (1, out) f32)."""
    params = []
    for i in range(len(layer_shape) - 1):
        d_in, d_out = layer_shape[i], layer_shape[i + 1]
        stdv = math.sqrt(6.0 / (d_in + d_out))
        key, sub = jax.random.split(key)
        # PyTorch weight is (out, in); sample in that shape then transpose so
        # the kernel does a plain row-major x @ W_t.
        w = jax.random.uniform(
            sub, (d_out, d_in), dtype=jnp.float32, minval=-stdv, maxval=stdv
        )
        b = jnp.zeros((1, d_out), dtype=jnp.float32)
        params.append((w.T, b))
    return params


def pack_params(params, d_in, *, compute_dtype=jnp.bfloat16):
    """Pad/cast parameters ONCE (not per forward call).

    * K of the first layer stays unpadded (full-dim blocks are legal).
    * All output/N dims (and hence later-layer K dims) are padded to 128 so
      activations are lane-dense; padded bias cols are 0, tanh(0)=0, and the
      next layer's padded K rows are 0, so the padded math is exact.
    * Weights are stored in `compute_dtype` (bf16 by default); biases stay f32.
    """
    dims = [d_in] + [w_t.shape[1] for (w_t, _) in params]
    dims_pad = [dims[0]] + [_round_up(d, _LANE) for d in dims[1:]]
    weights, biases = [], []
    for li, (w_t, b) in enumerate(params):
        k_in, n_out = w_t.shape
        kp, np_ = dims_pad[li], dims_pad[li + 1]
        wp = (
            jnp.zeros((kp, np_), compute_dtype)
            .at[:k_in, :n_out]
            .set(w_t.astype(compute_dtype))
        )
        bp = (
            jnp.zeros((1, np_), jnp.float32)
            .at[:, :n_out]
            .set(b.reshape(1, -1).astype(jnp.float32))
        )
        weights.append(wp)
        biases.append(bp)
    return dict(
        weights=weights,
        biases=biases,
        dims=dims,
        dims_pad=dims_pad,
        compute_dtype=compute_dtype,
    )


def mlp_forward(feature, packed, *, batch_tile=512, out_dtype=jnp.float32):
    """Fused forward pass of Net (repeated Linear -> tanh) in one pallas_call."""
    weights = packed["weights"]
    biases = packed["biases"]
    dims = packed["dims"]
    dims_pad = packed["dims_pad"]
    compute_dtype = packed["compute_dtype"]

    B, D0 = feature.shape
    assert D0 == dims[0], f"feature dim {D0} != expected {dims[0]}"
    n_layers = len(weights)

    # Batch tiling: multiples of 8 sublanes, big tiles (mem-bound roofline),
    # but >=2 tiles when possible so "parallel" can shard across v7x's 2 TCs.
    b8 = _round_up(B, _SUBLANE)
    tb = min(b8, _round_up(batch_tile, _SUBLANE))
    if b8 > _SUBLANE and b8 <= tb:
        tb = _round_up(pl.cdiv(b8, 2), _SUBLANE)
    b_pad = _round_up(b8, tb)
    grid = (b_pad // tb,)

    # Only the activation input is touched per call (cast + optional batch pad).
    x_in = feature.astype(compute_dtype)
    if b_pad != B:
        x_in = jnp.zeros((b_pad, D0), compute_dtype).at[:B].set(x_in)

    flat_inputs = [x_in]
    in_specs = [pl.BlockSpec((tb, D0), lambda i: (i, 0))]
    for wp, bp in zip(weights, biases):
        flat_inputs += [wp, bp]
        # Grid-invariant: constant block index (no re-DMA across batch tiles)
        # and a single buffer (no pointless double-buffer VMEM).
        in_specs.append(
            pl.BlockSpec(wp.shape, lambda i: (0, 0), pipeline_mode=pl.Buffered(1))
        )
        in_specs.append(
            pl.BlockSpec(bp.shape, lambda i: (0, 0), pipeline_mode=pl.Buffered(1))
        )

    # VMEM budget: resident (single-buffered) weights/biases + double-buffered
    # input/output tiles + f32 activation scratch headroom for the chained layers.
    wbytes = sum(int(w.size) * w.dtype.itemsize for w in weights)
    bbytes = sum(int(b.size) * b.dtype.itemsize for b in biases)
    io_bytes = (
        2 * tb * D0 * jnp.dtype(compute_dtype).itemsize
        + 2 * tb * dims_pad[-1] * jnp.dtype(out_dtype).itemsize
    )
    act_bytes = 3 * tb * max(dims_pad) * 4
    est = wbytes + bbytes + io_bytes + act_bytes
    vmem_limit = int(min(56 * 2**20, max(32 * 2**20, 2 * est)))

    out_pad = pl.pallas_call(
        _make_mlp_kernel(n_layers, compute_dtype),
        out_shape=jax.ShapeDtypeStruct((b_pad, dims_pad[-1]), out_dtype),
        grid_spec=pltpu.PrefetchScalarGridSpec(
            num_scalar_prefetch=0,
            grid=grid,
            in_specs=in_specs,
            out_specs=pl.BlockSpec((tb, dims_pad[-1]), lambda i: (i, 0)),
        ),
        compiler_params=pltpu.CompilerParams(
            dimension_semantics=("parallel",),  # batch axis: megacore-shardable
            vmem_limit_bytes=vmem_limit,
        ),
    )(*flat_inputs)

    return out_pad[:B, : dims[-1]]


def net_forward(feature, packed):
    """Forward pass of Net: repeated Linear -> tanh (single fused kernel)."""
    return mlp_forward(feature, packed)


if __name__ == "__main__":
    key = jax.random.PRNGKey(0)
    key, k_in = jax.random.split(key)

    # Small MLP consistent with the module: layer_shape defines widths.
    layer_shape = [32, 64, 32, 16]
    batch = 8

    params = init_params(layer_shape, key)                # f32 PyTorch-style params
    packed = pack_params(params, layer_shape[0])          # padded once, bf16 weights
    feature = jax.random.normal(k_in, (batch, layer_shape[0]), dtype=jnp.float32)

    out = net_forward(feature, packed)
    out = jax.block_until_ready(out)

    # Reference 1: same bf16-operand / f32-accumulate math in plain JAX.
    ref_bf16 = feature
    for w_t, b in params:
        ref_bf16 = jnp.tanh(
            jnp.dot(
                ref_bf16.astype(jnp.bfloat16),
                w_t.astype(jnp.bfloat16),
                preferred_element_type=jnp.float32,
            )
            + b
        )
    # Reference 2: full-f32 math (module semantics), loose tolerance for bf16 ops.
    ref_f32 = feature
    for w_t, b in params:
        ref_f32 = jnp.tanh(ref_f32 @ w_t + b)

    assert out.shape == (batch, layer_shape[-1])
    assert jnp.allclose(out, ref_bf16, atol=1e-3, rtol=1e-3)
    assert jnp.allclose(out, ref_f32, atol=3e-2, rtol=3e-2)

    print("KERNEL_OK")
</pallas_src>

<mosaic_0001>
module attributes {stable_mosaic.version = 11 : i64} {
  func.func @kernel(%arg0: i32, %arg1: memref<8x32xbf16, #tpu.memory_space<vmem>>, %arg2: memref<32x128xbf16, #tpu.memory_space<vmem>>, %arg3: memref<1x128xf32, #tpu.memory_space<vmem>>, %arg4: memref<128x128xbf16, #tpu.memory_space<vmem>>, %arg5: memref<1x128xf32, #tpu.memory_space<vmem>>, %arg6: memref<128x128xbf16, #tpu.memory_space<vmem>>, %arg7: memref<1x128xf32, #tpu.memory_space<vmem>>, %arg8: memref<8x128xf32, #tpu.memory_space<vmem>>) attributes {dimension_semantics = [#tpu.dimension_semantics<parallel>], iteration_bounds = array<i64: 1>, scalar_prefetch = 0 : i64, scratch_operands = 0 : i64, tpu.core_type = #tpu.core_type<tc>, window_params = [{transform_indices = @transform_0, window_bounds = array<i64: 8, 32>}, {pipeline_mode = #tpu.pipeline_mode<synchronous>, transform_indices = @transform_1, window_bounds = array<i64: 32, 128>}, {pipeline_mode = #tpu.pipeline_mode<synchronous>, transform_indices = @transform_2, window_bounds = array<i64: 1, 128>}, {pipeline_mode = #tpu.pipeline_mode<synchronous>, transform_indices = @transform_3, window_bounds = array<i64: 128, 128>}, {pipeline_mode = #tpu.pipeline_mode<synchronous>, transform_indices = @transform_4, window_bounds = array<i64: 1, 128>}, {pipeline_mode = #tpu.pipeline_mode<synchronous>, transform_indices = @transform_5, window_bounds = array<i64: 128, 128>}, {pipeline_mode = #tpu.pipeline_mode<synchronous>, transform_indices = @transform_6, window_bounds = array<i64: 1, 128>}, {transform_indices = @transform_7, window_bounds = array<i64: 8, 128>}]} {
    %c0 = arith.constant 0 : index
    %c0_0 = arith.constant 0 : index
    %0 = vector.load %arg1[%c0, %c0_0] : memref<8x32xbf16, #tpu.memory_space<vmem>>, vector<8x32xbf16>
    %c0_1 = arith.constant 0 : index
    %c0_2 = arith.constant 0 : index
    %1 = vector.load %arg2[%c0_1, %c0_2] : memref<32x128xbf16, #tpu.memory_space<vmem>>, vector<32x128xbf16>
    %c0_3 = arith.constant 0 : index
    %c0_4 = arith.constant 0 : index
    %2 = vector.load %arg3[%c0_3, %c0_4] : memref<1x128xf32, #tpu.memory_space<vmem>>, vector<1x128xf32>
    %cst = arith.constant dense<0.000000e+00> : vector<8x128xf32>
    %3 = tpu.matmul %0, %1, %cst {dimension_numbers = #tpu.dot_dimension_numbers<[1], [0], [0], [1], [0, 0, 1, 1], [], []>} : vector<8x32xbf16>, vector<32x128xbf16>, vector<8x128xf32> -> vector<8x128xf32>
    %4 = vector.broadcast %2 : vector<1x128xf32> to vector<8x128xf32>
    %5 = arith.addf %3, %4 : vector<8x128xf32>
    %6 = math.tanh %5 : vector<8x128xf32>
    %7 = arith.truncf %6 : vector<8x128xf32> to vector<8x128xbf16>
    %c0_5 = arith.constant 0 : index
    %c0_6 = arith.constant 0 : index
    %8 = vector.load %arg4[%c0_5, %c0_6] : memref<128x128xbf16, #tpu.memory_space<vmem>>, vector<128x128xbf16>
    %c0_7 = arith.constant 0 : index
    %c0_8 = arith.constant 0 : index
    %9 = vector.load %arg5[%c0_7, %c0_8] : memref<1x128xf32, #tpu.memory_space<vmem>>, vector<1x128xf32>
    %cst_9 = arith.constant dense<0.000000e+00> : vector<8x128xf32>
    %10 = tpu.matmul %7, %8, %cst_9 {dimension_numbers = #tpu.dot_dimension_numbers<[1], [0], [0], [1], [0, 0, 1, 1], [], []>} : vector<8x128xbf16>, vector<128x128xbf16>, vector<8x128xf32> -> vector<8x128xf32>
    %11 = vector.broadcast %9 : vector<1x128xf32> to vector<8x128xf32>
    %12 = arith.addf %10, %11 : vector<8x128xf32>
    %13 = math.tanh %12 : vector<8x128xf32>
    %14 = arith.truncf %13 : vector<8x128xf32> to vector<8x128xbf16>
    %c0_10 = arith.constant 0 : index
    %c0_11 = arith.constant 0 : index
    %15 = vector.load %arg6[%c0_10, %c0_11] : memref<128x128xbf16, #tpu.memory_space<vmem>>, vector<128x128xbf16>
    %c0_12 = arith.constant 0 : index
    %c0_13 = arith.constant 0 : index
    %16 = vector.load %arg7[%c0_12, %c0_13] : memref<1x128xf32, #tpu.memory_space<vmem>>, vector<1x128xf32>
    %cst_14 = arith.constant dense<0.000000e+00> : vector<8x128xf32>
    %17 = tpu.matmul %14, %15, %cst_14 {dimension_numbers = #tpu.dot_dimension_numbers<[1], [0], [0], [1], [0, 0, 1, 1], [], []>} : vector<8x128xbf16>, vector<128x128xbf16>, vector<8x128xf32> -> vector<8x128xf32>
    %18 = vector.broadcast %16 : vector<1x128xf32> to vector<8x128xf32>
    %19 = arith.addf %17, %18 : vector<8x128xf32>
    %20 = math.tanh %19 : vector<8x128xf32>
    %c0_15 = arith.constant 0 : index
    %c0_16 = arith.constant 0 : index
    %21 = vector.load %arg8[%c0_15, %c0_16] : memref<8x128xf32, #tpu.memory_space<vmem>>, vector<8x128xf32>
    tpu.vector_store %arg8[%c0_15, %c0_16], %20 {strides = array<i32>} : memref<8x128xf32, #tpu.memory_space<vmem>>, vector<8x128xf32>,
    return
  }
  func.func @transform_0(%arg0: i32) -> (i32, i32) {
    %c0_i32 = arith.constant 0 : i32
    %c0_i32_0 = arith.constant 0 : i32
    return %arg0, %c0_i32 : i32, i32
  }
  func.func @transform_1(%arg0: i32) -> (i32, i32) {
    %c0_i32 = arith.constant 0 : i32
    %c0_i32_0 = arith.constant 0 : i32
    %c0_i32_1 = arith.constant 0 : i32
    return %c0_i32, %c0_i32_0 : i32, i32
  }
  func.func @transform_2(%arg0: i32) -> (i32, i32) {
    %c0_i32 = arith.constant 0 : i32
    %c0_i32_0 = arith.constant 0 : i32
    %c0_i32_1 = arith.constant 0 : i32
    return %c0_i32, %c0_i32_0 : i32, i32
  }
  func.func @transform_3(%arg0: i32) -> (i32, i32) {
    %c0_i32 = arith.constant 0 : i32
    %c0_i32_0 = arith.constant 0 : i32
    %c0_i32_1 = arith.constant 0 : i32
    return %c0_i32, %c0_i32_0 : i32, i32
  }
  func.func @transform_4(%arg0: i32) -> (i32, i32) {
    %c0_i32 = arith.constant 0 : i32
    %c0_i32_0 = arith.constant 0 : i32
    %c0_i32_1 = arith.constant 0 : i32
    return %c0_i32, %c0_i32_0 : i32, i32
  }
  func.func @transform_5(%arg0: i32) -> (i32, i32) {
    %c0_i32 = arith.constant 0 : i32
    %c0_i32_0 = arith.constant 0 : i32
    %c0_i32_1 = arith.constant 0 : i32
    return %c0_i32, %c0_i32_0 : i32, i32
  }
  func.func @transform_6(%arg0: i32) -> (i32, i32) {
    %c0_i32 = arith.constant 0 : i32
    %c0_i32_0 = arith.constant 0 : i32
    %c0_i32_1 = arith.constant 0 : i32
    return %c0_i32, %c0_i32_0 : i32, i32
  }
  func.func @transform_7(%arg0: i32) -> (i32, i32) {
    %c0_i32 = arith.constant 0 : i32
    %c0_i32_0 = arith.constant 0 : i32
    return %arg0, %c0_i32 : i32, i32
  }
}

</mosaic_0001>

<bundles_post_ra>
// kernel: tpu_custom_call.1
= control target key start
LH: loop header
LB: loop body
LE: loop exit
PB: predicated region body
PF: predicated region fallthrough
CT: control target
= control target key end

     0   :  { %12 = vsyncpa [#allocation3], 0  ;;  %s732_s0 = inlined_call_operand.hbm [shape: bf16[8,32], index: 0, kind: input, shape index: {}]   ;;  %s733_s1 = inlined_call_operand.hbm [shape: bf16[32,128], index: 1, kind: input, shape index: {}]   ;;  %s734_s2 = inlined_call_operand.vmem [shape: f32[1,128], index: 2, kind: input, shape index: {}]   ;;  %s735_s3 = inlined_call_operand.hbm [shape: bf16[128,128], index: 3, kind: input, shape index: {}]   ;;  %s736_s4 = inlined_call_operand.vmem [shape: f32[1,128], index: 4, kind: input, shape index: {}]   ;;  %s737_s5 = inlined_call_operand.hbm [shape: bf16[128,128], index: 5, kind: input, shape index: {}]   ;;  %s738_s6 = inlined_call_operand.vmem [shape: f32[1,128], index: 6, kind: input, shape index: {}]   ;;  %s739_s7 = inlined_call_operand.hbm [shape: f32[8,128], index: 7, kind: output, shape index: {}]  }
   0x1   :  { %13 = vsyncpa [#allocation6], 0 }
   0x2   :  { %14 = vsyncpa [#allocation9], 0 }
   0x3   :  { %15 = vsyncpa [#allocation4], 0  ;;  %s626_s24 = smov [#allocation5]  }
   0x4   :  { %s31_s25 = sshll.u32 %s626_s24, 4  ;;  %s32_s25 = int_to_ptr.vmem [resolvable:$true] %s31_s25 }
   0x5   :  { %s526_s26 = scalar_lea.vmem %s32_s25, 256  ;;  %p531_p1 = scmp.lt.s32.totalorder %s32_s25, %s32_s25 }
   0x6   :  { %p527_p0 = scmp.ne.s32.totalorder %s32_s25, %s526_s26  ;;  %p532_p2 = scmp.lt.s32.totalorder %s526_s26, %s526_s26 }
   0x8   :  { %p533_p3 = por %p532_p2, %p531_p1 }
   0xa   :  { %p534_p4 = pnand %p533_p3, %p527_p0 }
   0xc   :  { %537 = shalt.err (!%p534_p4)
}
   0xd   :  { %s627_s27 = smov 64   ;;  %s628_s28 = smov 4  }
   0xe   :  { %37 = dma.hbm_to_vmem [thread:$0]  %s733_s1, 256, %s32_s25, [#allocation6], %s627_s27, %s627_s27, %s628_s28  }
   0xf   :  { %s629_s8 = smov [#allocation2]   ;;  %s630_s10 = smov [#allocation7]  }
  0x10   :  { %s22_s9 = sshll.u32 %s629_s8, 4  ;;  %s45_s11 = sshll.u32 %s630_s10, 4  ;;  %s23_s9 = int_to_ptr.vmem [resolvable:$true] %s22_s9  ;;  %s46_s11 = int_to_ptr.vmem [resolvable:$true] %s45_s11 }
  0x11   :  { %s546_s12 = scalar_lea.vmem %s23_s9, 64  ;;  %p551_p6 = scmp.lt.s32.totalorder %s23_s9, %s23_s9 }
  0x12   :  { %p547_p5 = scmp.ne.s32.totalorder %s23_s9, %s546_s12  ;;  %p552_p7 = scmp.lt.s32.totalorder %s546_s12, %s546_s12 }
  0x14   :  { %p553_p8 = por %p552_p7, %p551_p6 }
  0x16   :  { %p554_p9 = pnand %p553_p8, %p547_p5 }
  0x18   :  { %557 = shalt.err (!%p554_p9)
}
  0x19   :  { %25 = dma.hbm_to_vmem [thread:$0]  %s732_s0, 64, %s23_s9, [#allocation3]  }
  0x1a   :  { %s566_s15 = scalar_lea.vmem %s46_s11, 1024  ;;  %p571_p11 = scmp.lt.s32.totalorder %s46_s11, %s46_s11 }
  0x1b   :  { %p567_p10 = scmp.ne.s32.totalorder %s46_s11, %s566_s15  ;;  %p572_p12 = scmp.lt.s32.totalorder %s566_s15, %s566_s15 }
  0x1d   :  { %p573_p13 = por %p572_p12, %p571_p11 }
  0x1f   :  { %p574_p0 = pnand %p573_p13, %p567_p10 }
  0x21   :  { %577 = shalt.err (!%p574_p0)
}
  0x22   :  { %51 = dma.hbm_to_vmem [thread:$0]  %s735_s3, 1024, %s46_s11, [#allocation6], %s627_s27, %s627_s27, %s628_s28  }
  0x23   :  { %s631_s17 = smov [#allocation8]  }
  0x24   :  { %s59_s18 = sshll.u32 %s631_s17, 4  ;;  %s60_s18 = int_to_ptr.vmem [resolvable:$true] %s59_s18 }
  0x25   :  { %s586_s19 = scalar_lea.vmem %s60_s18, 1024  ;;  %p591_p2 = scmp.lt.s32.totalorder %s60_s18, %s60_s18 }
  0x26   :  { %p587_p1 = scmp.ne.s32.totalorder %s60_s18, %s586_s19  ;;  %p592_p3 = scmp.lt.s32.totalorder %s586_s19, %s586_s19 }
  0x28   :  { %p593_p4 = por %p592_p3, %p591_p2 }
  0x2a   :  { %p594_p5 = pnand %p593_p4, %p587_p1 }
  0x2c   :  { %597 = shalt.err (!%p594_p5)
}
  0x2d   :  { %65 = dma.hbm_to_vmem [thread:$0]  %s737_s5, 1024, %s60_s18, [#allocation9], %s627_s27, %s627_s27, %s628_s28  }
  0x2e   :  { %618 = dma.done.wait [#allocation3], 64  }
  0x2f   :  { %619 = vsyncadd [#allocation3], 4294967232 }
  0x30   :  { %620 = dma.done.wait [#allocation6], 1280  }
  0x31   :  { %621 = vsyncadd [#allocation6], 4294966016 }
  0x32   :  { %622 = dma.done.wait [#allocation9], 1024  }
  0x33   :  { %623 = vsyncadd [#allocation9], 4294966272  ;;  %v632_v0 = vmov 0.0   ;;  %vm633_vm0 = vmmov 0   ;;  %v494_v1 = vld [vmem:[#allocation5 + $0x8] sm:$0xff]   ;;  %v495_v2 = vld [vmem:[#allocation5] sm:$0xff]  }
  0x34   :  { %437 = vmatprep.subr.bf16.mxu0 %v632_v0  ;;  %441 = vmatprep.mubr.msk.bf16.mxu0 %vm633_vm0, %v632_v0  ;;  %v496_v3 = vld [vmem:[#allocation7 + $0x38] sm:$0xff]   ;;  %v81_v4 = vld [vmem:[#allocation2] sm:$0xf]  ;;  %vm105_vm1 = vcmask 261120   ;;  %v497_v5 = vld [vmem:[#allocation7 + $0x30] sm:$0xff]  }
  0x35   :  { %445 = vmatprep.subr.bf16.mxu1 %v632_v0  ;;  %461 = vmatprep.mubr.msk.bf16.mxu1 %vm633_vm0, %v632_v0  ;;  %v498_v6 = vld [vmem:[#allocation7 + $0x28] sm:$0xff]   ;;  %v499_v7 = vld [vmem:[#allocation7 + $0x20] sm:$0xff]   ;;  %v500_v8 = vld [vmem:[#allocation7 + $0x18] sm:$0xff]  }
  0x36   :  { %438 = vmatpush3.bf16.msra.mxu0 %v494_v1  ;;  %446 = vmatpush3.bf16.msra.mxu1 %v496_v3  ;;  %v501_v9 = vld [vmem:[#allocation7 + $0x10] sm:$0xff]   ;;  %v502_v10 = vld [vmem:[#allocation7 + $0x8] sm:$0xff]   ;;  %v503_v11 = vld [vmem:[#allocation7] sm:$0xff]  }
  0x37   :  { %439 = vmatprep.subr.bf16.mxu0 %v632_v0  ;;  %447 = vmatprep.subr.bf16.mxu1 %v632_v0  ;;  %v504_v12 = vld [vmem:[#allocation8 + $0x38] sm:$0xff]   ;;  %v505_v13 = vld [vmem:[#allocation8 + $0x30] sm:$0xff]   ;;  %v506_v14 = vld [vmem:[#allocation8 + $0x28] sm:$0xff]  }
  0x38   :  { %v394_v15 = vld [vmem:[%s734_s2] ss:$0 sm:$0xff]  ;;  %v507_v23 = vld [vmem:[#allocation8 + $0x20] sm:$0xff]   ;;  %v508_v24 = vld [vmem:[#allocation8 + $0x18] sm:$0xff]  }
  0x39   :  { %v509_v25 = vld [vmem:[#allocation8 + $0x10] sm:$0xff]   ;;  %v510_v26 = vld [vmem:[#allocation8 + $0x8] sm:$0xff]   ;;  %v511_v27 = vld [vmem:[#allocation8] sm:$0xff]  }
  0x3a   :  { %440 = vmatpush3.bf16.msra.mxu0 %v495_v2  ;;  %448 = vmatpush3.bf16.msra.mxu1 %v497_v5  ;;  %v398_v28 = vld [vmem:[%s736_s4] ss:$0 sm:$0xff]  ;;  %s634_s4 = smov [#allocation10]  }
  0x3b   :  { %465 = vmatprep.subr.bf16.mxu0 %v632_v0  ;;  %449 = vmatprep.subr.bf16.mxu1 %v632_v0  ;;  %v407_v36 = vld [vmem:[%s738_s6] ss:$0 sm:$0xff]  ;;  %s383_s24 = sshll.u32 %s634_s4, 4  ;;  %s384_s24 = int_to_ptr.vmem [resolvable:$true] %s383_s24 }
  0x3c   :  { %s598_s25 = scalar_lea.vmem %s384_s24, 128  ;;  %p603_p7 = scmp.lt.s32.totalorder %s384_s24, %s384_s24 }
  0x3d   :  { %442 = vmatmul.mubr.msk.bf16.vlgmr.msra.gmra.mxu0 %vm105_vm1, %v81_v4  ;;  %p599_p6 = scmp.ne.s32.totalorder %s384_s24, %s598_s25  ;;  %p604_p8 = scmp.lt.s32.totalorder %s598_s25, %s598_s25 }
  0x3e   :  { %481 = vmatprep.mubr.msk.bf16.mxu0 %vm633_vm0, %v632_v0  ;;  %450 = vmatpush3.bf16.msra.mxu1 %v498_v6 }
  0x3f   :  { %451 = vmatprep.subr.bf16.mxu1 %v632_v0  ;;  %466 = vmatpush3.bf16.msra.mxu0 %v504_v12  ;;  %p605_p9 = por %p604_p8, %p603_p7 }
  0x40   :  { %467 = vmatprep.subr.bf16.mxu0 %v632_v0 }
  0x41   :  { %p606_p10 = pnand %p605_p9, %p599_p6 }
  0x42   :  { %452 = vmatpush3.bf16.msra.mxu1 %v499_v7 }
  0x43   :  { %453 = vmatprep.subr.bf16.mxu1 %v632_v0  ;;  %468 = vmatpush3.bf16.msra.mxu0 %v505_v13 }
  0x44   :  { %469 = vmatprep.subr.bf16.mxu0 %v632_v0 }
  0x46   :  { %454 = vmatpush3.bf16.msra.mxu1 %v500_v8 }
  0x47   :  { %455 = vmatprep.subr.bf16.mxu1 %v632_v0  ;;  %470 = vmatpush3.bf16.msra.mxu0 %v506_v14 }
  0x48   :  { %471 = vmatprep.subr.bf16.mxu0 %v632_v0 }
  0x4a   :  { %456 = vmatpush3.bf16.msra.mxu1 %v501_v9 }
  0x4b   :  { %457 = vmatprep.subr.bf16.mxu1 %v632_v0  ;;  %472 = vmatpush3.bf16.msra.mxu0 %v507_v23 }
  0x4c   :  { %473 = vmatprep.subr.bf16.mxu0 %v632_v0 }
  0x4e   :  { %458 = vmatpush3.bf16.msra.mxu1 %v502_v10 }
  0x4f   :  { %459 = vmatprep.subr.bf16.mxu1 %v632_v0  ;;  %474 = vmatpush3.bf16.msra.mxu0 %v508_v24 }
  0x50   :  { %475 = vmatprep.subr.bf16.mxu0 %v632_v0 }
  0x52   :  { %460 = vmatpush3.bf16.msra.mxu1 %v503_v11 }
  0x53   :  { %476 = vmatpush3.bf16.msra.mxu0 %v509_v25 }
  0x54   :  { %477 = vmatprep.subr.bf16.mxu0 %v632_v0 }
  0x57   :  { %478 = vmatpush3.bf16.msra.mxu0 %v510_v26 }
  0x58   :  { %479 = vmatprep.subr.bf16.mxu0 %v632_v0 }
  0x5b   :  { %480 = vmatpush3.bf16.msra.mxu0 %v511_v27 }
  0xfd   :  { %v143_v16 = vpop.f32.mrf.mxu0 }
  0xfe   :  { %v144_v17 = vadd.f32 %v394_v15, %v143_v16 }
  0xff   :  { %v443_v18 = vpop.f32.mrf.mxu0 }
 0x100   :  { %512 = vtanh.f32 %v144_v17 }
 0x101   :  { %v146_v19 = vpop.f32.mrf.mxu0 }
 0x103   :  { %v444_v20 = vpop.f32.mrf.mxu0 }
 0x10d   :  { %v513_v21 = vpop.eup %512 }
 0x10e   :  { %v150_v22 = vpack.c.bf16 %v513_v21, %v513_v21 }
 0x110   :  { %462 = vmatmul.mubr.bf16.vlgmr.msra.gmra.mxu1 %v150_v22 }
 0x1d0   :  { %v256_v29 = vpop.f32.mrf.mxu1 }
 0x1d1   :  { %v257_v30 = vadd.f32 %v398_v28, %v256_v29 }
 0x1d2   :  { %v463_v31 = vpop.f32.mrf.mxu1 }
 0x1d3   :  { %514 = vtanh.f32 %v257_v30 }
 0x1d4   :  { %v259_v32 = vpop.f32.mrf.mxu1 }
 0x1d6   :  { %v464_v33 = vpop.f32.mrf.mxu1 }
 0x1e0   :  { %v515_v34 = vpop.eup %514 }
 0x1e1   :  { %v263_v35 = vpack.c.bf16 %v515_v34, %v515_v34 }
 0x1e3   :  { %482 = vmatmul.mubr.bf16.vlgmr.msra.gmra.mxu0 %v263_v35 }
 0x2a3   :  { %v369_v37 = vpop.f32.mrf.mxu0 }
 0x2a4   :  { %v370_v38 = vadd.f32 %v407_v36, %v369_v37 }
 0x2a5   :  { %v483_v39 = vpop.f32.mrf.mxu0 }
 0x2a6   :  { %516 = vtanh.f32 %v370_v38 }
 0x2a7   :  { %v372_v40 = vpop.f32.mrf.mxu0 }
 0x2a9   :  { %v484_v41 = vpop.f32.mrf.mxu0 }
 0x2b3   :  { %v517_v42 = vpop.eup %516 }
 0x2b4   :  { %376 = vst [vmem:[#allocation10] sm:$0xff] %v517_v42 }
 0x2b5   :  { %609 = shalt.err (!%p606_p10)
}
 0x2b6   :  { %386 = dma.vmem_to_hbm [thread:$0]  %s384_s24, 128, %s739_s7, [#allocation4]  }
 0x2b7   :  { %624 = dma.done.wait [#allocation4], 128  }
 0x2b8   :  { %625 = vsyncadd [#allocation4], 4294967168 }
 0x2b9   :  { %390 = vsyncpa [#allocation3], 1 }
 0x2ba   :  { %391 = vsyncpa [#allocation6], 1 }
 0x2bb   :  { %392 = vsyncpa [#allocation9], 1 }
 0x2bc   :  { %393 = vsyncpa [#allocation4], 1 }

</bundles_post_ra>
